<compile_context>
chip_gen: v5e
topology: v5e:2x2
jax: 0.10.0
libtpu: 0.0.40
codegen_flags: <defaults>
</compile_context>

<pallas_src>
import functools
import math

import jax
import jax.numpy as jnp
from jax import lax
from jax.experimental import pallas as pl
from jax.experimental.pallas import tpu as pltpu


def cost_kernel(x_ref, y_ref, c_ref, cmax_ref):
    """Per-batch-block squared-euclidean cost matrix via the Gram identity (MXU)."""
    x = x_ref[...]                                           # (bb, Ns, D)
    y = y_ref[...]                                           # (bb, Nt, D)
    xx = jnp.sum(x * x, axis=-1)[:, :, None]                 # (bb, Ns, 1)
    yy = jnp.sum(y * y, axis=-1)[:, None, :]                 # (bb, 1, Nt)
    xy = jnp.einsum('bid,bjd->bij', x, y,
                    preferred_element_type=jnp.float32)      # MXU
    c = jnp.maximum(xx + yy - 2.0 * xy, 0.0)                 # (bb, Ns, Nt), >= 0
    c_ref[...] = c
    # Broadcast this block's max into a lane-dense (8,128) tile; the global max over
    # the batch is a trivial jnp.max over these tiles in the wrapper.
    cmax_ref[...] = jnp.full(cmax_ref.shape, jnp.max(c), dtype=cmax_ref.dtype)


def sinkhorn_kernel(inv_ref, c_ref, cost_ref, pi_ref, cn_ref, *,
                    eps, thresh, max_iter):
    """Sinkhorn iterations with a real early exit (lax.while_loop, register-carried)."""
    bb, Ns, Nt = c_ref.shape
    inv_eps = 1.0 / eps
    # Uniform marginals (mask=None path): mu = 1/Ns, nu = 1/Nt; fold eps*log() into
    # compile-time constants.
    c_mu = eps * math.log(1.0 / Ns + 1e-8)
    c_nu = eps * math.log(1.0 / Nt + 1e-8)

    cn = c_ref[...] * inv_ref[0]          # C / C.max()  (global max, PyTorch semantics)
    cn_ref[...] = cn
    ce = cn * (-inv_eps)                  # hoisted loop-invariant -C/eps
    # Ones block for routing the cross-sublane (column) sum through the MXU.
    ones_r = jnp.ones((bb, 8, Ns), jnp.float32)

    def cond(carry):
        it, err, _, _ = carry
        return jnp.logical_and(it < max_iter, err >= thresh)

    def body(carry):
        it, _, u, v = carry               # u: (bb, Ns), v: (bb, Nt) lane-dense
        ve = v * inv_eps
        m1 = ce + (u * inv_eps)[:, :, None] + ve[:, None, :]     # (-C + u + v)/eps
        s1 = jnp.sum(jnp.exp(m1), axis=-1)                       # lane-axis reduce
        u_new = c_mu - eps * jnp.log(1e-8 + s1) + u
        m2 = ce + (u_new * inv_eps)[:, :, None] + ve[:, None, :]
        e2 = jnp.exp(m2)
        s2 = jnp.einsum('bri,bij->brj', ones_r, e2,              # column sum on MXU
                        preferred_element_type=jnp.float32)[:, 0, :]
        v_new = c_nu - eps * jnp.log(1e-8 + s2) + v
        err = jnp.max(jnp.sum(jnp.abs(u_new - u), axis=-1))      # max_b sum_i |du|
        return (it + 1, err, u_new, v_new)

    init = (jnp.int32(0), jnp.float32(jnp.inf),
            jnp.zeros((bb, Ns), jnp.float32), jnp.zeros((bb, Nt), jnp.float32))
    _, _, u, v = lax.while_loop(cond, body, init)

    pi = jnp.exp(ce + (u * inv_eps)[:, :, None] + (v * inv_eps)[:, None, :])
    pi_ref[...] = pi
    t = jnp.sum(pi * cn, axis=-1, keepdims=True)                 # (bb, Ns, 1)
    cost_ref[...] = jnp.sum(t, axis=1, keepdims=True)            # (bb, 1, 1)


def gtot_forward(x, y, *, eps=0.1, thresh=0.1, max_iter=100,
                 batch_block=None, cost_batch_block=1):
    """GTOT.forward(x, y) with C=None, A=None, mask=None, reduction='none'.

    batch_block=None (default): whole batch in one Sinkhorn grid step -> batch-global
    early stop, exactly the PyTorch semantics.  batch_block < bs: parallel batch-tiled
    Sinkhorn (per-block early stop; C output is unchanged).
    """
    x = x.astype(jnp.float32)
    y = y.astype(jnp.float32)
    bs, Ns, D = x.shape
    _, Nt, _ = y.shape

    bba = cost_batch_block
    if bs % bba != 0:
        raise ValueError(f"cost_batch_block={bba} must divide batch={bs}")
    nba = bs // bba

    # Phase 1: un-normalized cost matrix + per-block max tiles.
    c_raw, cmax_tiles = pl.pallas_call(
        cost_kernel,
        out_shape=(jax.ShapeDtypeStruct((bs, Ns, Nt), jnp.float32),
                   jax.ShapeDtypeStruct((nba * 8, 128), jnp.float32)),
        grid=(nba,),
        in_specs=[pl.BlockSpec((bba, Ns, D), lambda b: (b, 0, 0)),
                  pl.BlockSpec((bba, Nt, D), lambda b: (b, 0, 0))],
        out_specs=(pl.BlockSpec((bba, Ns, Nt), lambda b: (b, 0, 0)),
                   pl.BlockSpec((8, 128), lambda b: (b, 0))),
        compiler_params=pltpu.CompilerParams(
            dimension_semantics=("parallel",),
            vmem_limit_bytes=32 * 1024 * 1024),
    )(x, y)

    # Global max over the whole batch (PyTorch: C = C / C.max()); its inverse is passed
    # to the Sinkhorn kernel through SMEM so the normalization stays in-kernel.
    inv_max = (1.0 / jnp.max(cmax_tiles)).reshape(1).astype(jnp.float32)

    bbb = bs if batch_block is None else batch_block
    if bs % bbb != 0:
        raise ValueError(f"batch_block={bbb} must divide batch={bs}")
    nbb = bs // bbb

    kernel = functools.partial(sinkhorn_kernel, eps=eps, thresh=thresh,
                               max_iter=max_iter)
    cost3, pi, c_norm = pl.pallas_call(
        kernel,
        out_shape=(jax.ShapeDtypeStruct((bs, 1, 1), jnp.float32),   # cost
                   jax.ShapeDtypeStruct((bs, Ns, Nt), jnp.float32), # pi
                   jax.ShapeDtypeStruct((bs, Ns, Nt), jnp.float32)),  # normalized C
        grid=(nbb,),
        in_specs=[pl.BlockSpec(memory_space=pltpu.MemorySpace.SMEM),  # 1/max scalar
                  pl.BlockSpec((bbb, Ns, Nt), lambda b: (b, 0, 0))],
        out_specs=(pl.BlockSpec((bbb, 1, 1), lambda b: (b, 0, 0)),
                   pl.BlockSpec((bbb, Ns, Nt), lambda b: (b, 0, 0)),
                   pl.BlockSpec((bbb, Ns, Nt), lambda b: (b, 0, 0))),
        compiler_params=pltpu.CompilerParams(
            dimension_semantics=("parallel",),
            vmem_limit_bytes=32 * 1024 * 1024),
    )(inv_max, c_raw)

    return cost3[:, 0, 0], pi, c_norm
    # TODO(synk): mask / sparse-adjacency (A) branches and 'mean'/'sum' reductions of
    # the original module are not implemented (default forward path only).


def gtot_reference(x, y, *, eps=0.1, thresh=0.1, max_iter=100):
    """Pure-JAX port of the PyTorch forward (mask=None, A=None, reduction='none')."""
    C = jnp.sum(jnp.abs(x[:, :, None, :] - y[:, None, :, :]) ** 2, axis=-1)
    C = C / jnp.max(C)
    bs, Ns, Nt = C.shape
    mu = jnp.full((bs, Ns), 1.0 / Ns, jnp.float32)
    nu = jnp.full((bs, Nt), 1.0 / Nt, jnp.float32)
    u = jnp.zeros_like(mu)
    v = jnp.zeros_like(nu)

    def exp_M(u, v):
        return jnp.exp((-C + u[:, :, None] + v[:, None, :]) / eps)

    for _ in range(max_iter):
        u1 = u
        u = eps * (jnp.log(mu + 1e-8) - jnp.log(1e-8 + exp_M(u, v).sum(-1))) + u
        v = eps * (jnp.log(nu + 1e-8)
                   - jnp.log(1e-8 + jnp.swapaxes(exp_M(u, v), -2, -1).sum(-1))) + v
        err = jnp.max(jnp.sum(jnp.abs(u - u1), axis=-1))
        if float(err) < thresh:
            break

    pi = exp_M(u, v)
    cost = jnp.sum(pi * C, axis=(-2, -1))
    return cost, pi, C


if __name__ == "__main__":
    key = jax.random.PRNGKey(0)
    kx, ky = jax.random.split(key)
    bs, N, D = 2, 8, 32
    x = jax.random.normal(kx, (bs, N, D), dtype=jnp.float32)
    y = jax.random.normal(ky, (bs, N, D), dtype=jnp.float32)

    # Exact-semantics path: whole batch in one Sinkhorn block (batch-global early stop).
    cost, pi, C = gtot_forward(x, y)
    jax.block_until_ready((cost, pi, C))

    cost_r, pi_r, C_r = gtot_reference(x, y)
    assert cost.shape == (bs,) and pi.shape == (bs, N, N) and C.shape == (bs, N, N)
    assert bool(jnp.all(jnp.isfinite(cost)))
    assert jnp.allclose(C, C_r, rtol=1e-3, atol=1e-4)
    assert jnp.allclose(pi, pi_r, rtol=1e-3, atol=1e-3)
    assert jnp.allclose(cost, cost_r, rtol=1e-3, atol=1e-3)

    # Batch-tiled path (parallel grid over batch, per-block early stop). C is identical
    # to the reference; pi/cost may differ by up to the early-stop tolerance.
    cost_t, pi_t, C_t = gtot_forward(x, y, batch_block=1, cost_batch_block=1)
    jax.block_until_ready((cost_t, pi_t, C_t))
    assert jnp.allclose(C_t, C_r, rtol=1e-3, atol=1e-4)
    assert bool(jnp.all(jnp.isfinite(cost_t))) and bool(jnp.all(jnp.isfinite(pi_t)))

    print("KERNEL_OK")
</pallas_src>

<mosaic_0001>
module attributes {stable_mosaic.version = 11 : i64} {
  func.func @cost_kernel(%arg0: i32, %arg1: memref<1x8x32xf32, #tpu.memory_space<vmem>>, %arg2: memref<1x8x32xf32, #tpu.memory_space<vmem>>, %arg3: memref<1x8x8xf32, #tpu.memory_space<vmem>>, %arg4: memref<8x128xf32, #tpu.memory_space<vmem>>) attributes {dimension_semantics = [#tpu.dimension_semantics<parallel>], iteration_bounds = array<i64: 2>, scalar_prefetch = 0 : i64, scratch_operands = 0 : i64, tpu.core_type = #tpu.core_type<tc>, window_params = [{transform_indices = @transform_0, window_bounds = array<i64: 1, 8, 32>}, {transform_indices = @transform_1, window_bounds = array<i64: 1, 8, 32>}, {transform_indices = @transform_2, window_bounds = array<i64: 1, 8, 8>}, {transform_indices = @transform_3, window_bounds = array<i64: 8, 128>}]} {
    %c0 = arith.constant 0 : index
    %c0_0 = arith.constant 0 : index
    %c0_1 = arith.constant 0 : index
    %0 = vector.load %arg1[%c0, %c0_0, %c0_1] : memref<1x8x32xf32, #tpu.memory_space<vmem>>, vector<1x8x32xf32>
    %c0_2 = arith.constant 0 : index
    %c0_3 = arith.constant 0 : index
    %c0_4 = arith.constant 0 : index
    %1 = vector.load %arg2[%c0_2, %c0_3, %c0_4] : memref<1x8x32xf32, #tpu.memory_space<vmem>>, vector<1x8x32xf32>
    %2 = arith.mulf %0, %0 : vector<1x8x32xf32>
    %cst = arith.constant dense<0.000000e+00> : vector<1x8xf32>
    %3 = vector.multi_reduction <add>, %2, %cst [2] : vector<1x8x32xf32> to vector<1x8xf32>
    %4 = vector.shape_cast %3 : vector<1x8xf32> to vector<1x8x1xf32>
    %5 = arith.mulf %1, %1 : vector<1x8x32xf32>
    %cst_5 = arith.constant dense<0.000000e+00> : vector<1x8xf32>
    %6 = vector.multi_reduction <add>, %5, %cst_5 [2] : vector<1x8x32xf32> to vector<1x8xf32>
    %7 = vector.shape_cast %6 : vector<1x8xf32> to vector<1x1x8xf32>
    "tpu.trace_start"() <{level = 10 : i32, message = "bid,bjd->bij"}> : () -> ()
    %cst_6 = arith.constant dense<0.000000e+00> : vector<1x8x8xf32>
    %8 = tpu.matmul %0, %1, %cst_6 {dimension_numbers = #tpu.dot_dimension_numbers<[2], [2], [1], [1], [0, 0, 0, 1, 1, 1], [0], [0]>} : vector<1x8x32xf32>, vector<1x8x32xf32>, vector<1x8x8xf32> -> vector<1x8x8xf32>
    "tpu.trace_stop"() : () -> ()
    %9 = vector.broadcast %4 : vector<1x8x1xf32> to vector<1x8x8xf32>
    %10 = vector.broadcast %7 : vector<1x1x8xf32> to vector<1x8x8xf32>
    %11 = arith.addf %9, %10 : vector<1x8x8xf32>
    %cst_7 = arith.constant 2.000000e+00 : f32
    %12 = vector.broadcast %cst_7 : f32 to vector<1x8x8xf32>
    %13 = arith.mulf %12, %8 : vector<1x8x8xf32>
    %14 = arith.subf %11, %13 : vector<1x8x8xf32>
    %cst_8 = arith.constant 0.000000e+00 : f32
    %15 = vector.broadcast %cst_8 : f32 to vector<1x8x8xf32>
    %16 = arith.maximumf %14, %15 : vector<1x8x8xf32>
    %c0_9 = arith.constant 0 : index
    %c0_10 = arith.constant 0 : index
    %c0_11 = arith.constant 0 : index
    %17 = vector.load %arg3[%c0_9, %c0_10, %c0_11] : memref<1x8x8xf32, #tpu.memory_space<vmem>>, vector<1x8x8xf32>
    tpu.vector_store %arg3[%c0_9, %c0_10, %c0_11], %16 {strides = array<i32>} : memref<1x8x8xf32, #tpu.memory_space<vmem>>, vector<1x8x8xf32>,
    %18 = vector.shape_cast %16 : vector<1x8x8xf32> to vector<1x1x8x8xf32>
    %cst_12 = arith.constant dense<0xFF800000> : vector<1xf32>
    %19 = vector.multi_reduction <maximumf>, %18, %cst_12 [1, 2, 3] : vector<1x1x8x8xf32> to vector<1xf32>
    %20 = vector.shape_cast %19 : vector<1xf32> to vector<1x1x1x1xf32>
    %21 = vector.extract %20[0, 0, 0, 0] : f32 from vector<1x1x1x1xf32>
    %22 = vector.broadcast %21 : f32 to vector<8x128xf32>
    %c0_13 = arith.constant 0 : index
    %c0_14 = arith.constant 0 : index
    %23 = vector.load %arg4[%c0_13, %c0_14] : memref<8x128xf32, #tpu.memory_space<vmem>>, vector<8x128xf32>
    tpu.vector_store %arg4[%c0_13, %c0_14], %22 {strides = array<i32>} : memref<8x128xf32, #tpu.memory_space<vmem>>, vector<8x128xf32>,
    return
  }
  func.func @transform_0(%arg0: i32) -> (i32, i32, i32) {
    %c0_i32 = arith.constant 0 : i32
    %c0_i32_0 = arith.constant 0 : i32
    %c0_i32_1 = arith.constant 0 : i32
    return %arg0, %c0_i32, %c0_i32_0 : i32, i32, i32
  }
  func.func @transform_1(%arg0: i32) -> (i32, i32, i32) {
    %c0_i32 = arith.constant 0 : i32
    %c0_i32_0 = arith.constant 0 : i32
    %c0_i32_1 = arith.constant 0 : i32
    return %arg0, %c0_i32, %c0_i32_0 : i32, i32, i32
  }
  func.func @transform_2(%arg0: i32) -> (i32, i32, i32) {
    %c0_i32 = arith.constant 0 : i32
    %c0_i32_0 = arith.constant 0 : i32
    %c0_i32_1 = arith.constant 0 : i32
    return %arg0, %c0_i32, %c0_i32_0 : i32, i32, i32
  }
  func.func @transform_3(%arg0: i32) -> (i32, i32) {
    %c0_i32 = arith.constant 0 : i32
    %c0_i32_0 = arith.constant 0 : i32
    return %arg0, %c0_i32 : i32, i32
  }
}

</mosaic_0001>

<bundles_post_ra>
// kernel: tpu_custom_call.1
= control target key start
LH: loop header
LB: loop body
LE: loop exit
PB: predicated region body
PF: predicated region fallthrough
CT: control target
= control target key end

     0   :  { %9 = vsyncpa [#allocation3], 0  ;;  %s913_s0 = inlined_call_operand.hbm [shape: f32[2,8,32], index: 0, kind: input, shape index: {}]   ;;  %s914_s1 = inlined_call_operand.hbm [shape: f32[2,8,32], index: 1, kind: input, shape index: {}]   ;;  %s915_s2 = inlined_call_operand.hbm [shape: f32[2,8,8], index: 2, kind: output, shape index: {0}]   ;;  %s916_s3 = inlined_call_operand.hbm [shape: f32[16,128], index: 3, kind: output, shape index: {1}]  }
   0x1   :  { %11 = vsyncpa [#allocation3 + $0x1], 0 }
   0x2   :  { %12 = vsyncpa [#allocation6], 0 }
   0x3   :  { %14 = vsyncpa [#allocation6 + $0x1], 0 }
   0x4   :  { %15 = vsyncpa [#allocation4], 0 }
   0x5   :  { %17 = vsyncpa [#allocation4 + $0x1], 0 }
   0x6   :  { %18 = vsyncpa [#allocation9], 0 }
   0x7   :  { %20 = vsyncpa [#allocation9 + $0x1], 0  ;;  %s733_s12 = smov 0   ;;  %s735_s13 = smov 0  }
   0x8   :  { %s737_s14 = smov 0   ;;  %s739_s15 = smov 0  }
   0x9 LB: > { %s754_s16 = sadd.s32 4294967295, %s711_s15   ;;  %s471_s17 = sadd.s32 4294967294, %s711_s15   ;;  %s711_s15 = sphi %s739_s15, %s927_s15   ;;  %s707_s14 = sphi %s737_s14, %s926_s14   ;;  %s703_s13 = sphi %s735_s13, %s925_s13   ;;  %s699_s12 = sphi %s733_s12, %s924_s12  }
   0xa   : > { %s758_s18 = sadd.s32 1, %s711_s15   ;;  %s33_s19 = sadd.s32 1, %s707_s14 }
   0xb   : > { %s30_s20 = ssub.s32 %s711_s15, %s758_s18  ;;  %p40_p0 = scmp.ne.s32.totalorder %s707_s14, %s703_s13 }
   0xc   : > { %p31_p1 = scmp.eq.s32.totalorder %s30_s20, 0  ;;  %p41_p2 = scmp.eq.s32.totalorder %s711_s15, 0 }
   0xd   : > { %p46_p3 = scmp.ne.s32.totalorder %s703_s13, %s699_s12  ;;  %p47_p4 = scmp.eq.s32.totalorder %s754_s16, 0 }
   0xe   : > { %s770_s21 = scalar_select %p31_p1, %s707_s14, %s33_s19  }
   0xf   : > { %p772_p5 = por %p41_p2, %p40_p0  ;;  %p776_p6 = por %p47_p4, %p46_p3 }
  0x10   : > { %p96_p7 = scmp.eq.s32.totalorder %s754_s16, 1  ;;  %p102_p8 = scmp.eq.s32.totalorder %s471_s17, 1 }
  0x11   : > { %p515_p10 = scmp.lt.s32.totalorder %s711_s15, 2  ;;  %s792_s26 = sand.u32 1, %s707_s14  }
  0x12   : > { %p783_p11 = por %p96_p7, %p40_p0  ;;  %p787_p12 = por %p102_p8, %p46_p3 }
  0x13   : > { %s475_s27 = sshll.u32 %s711_s15, 3  ;;  %s474_s28 = sshll.u32 %s792_s26, 3 }
  0x14   : > { %s156_s4 = scalar_lea.hbm %s913_s0, %s475_s27  ;;  %s152_s6 = scalar_lea.vmem [#allocation2], %s474_s28 }
  0x15   : > { %s158_s5 = sshll.u32 %s156_s4, 4  ;;  %s160_s7 = sshll.u32 %s152_s6, 4  ;;  %s159_s5 = int_to_ptr.hbm [resolvable:$true] %s158_s5  ;;  %s161_s7 = int_to_ptr.vmem [resolvable:$true] %s160_s7 }
  0x16   : > { %p801_p13 = pnand %p515_p10, %p772_p5  ;;  %p478_p0 = scmp.ge.s32.totalorder %s711_s15, 1 }
  0x17   : > { %p184_p1 = scmp.lt.s32.totalorder %s711_s15, 3  ;;  %s149_s9 = scalar_lea.sflag [#allocation3], %s792_s26 }
  0x18   : > { %s549_s10 = sshra.s32 %s159_s5, 4  ;;  %p553_p3 = pneg %p801_p13  ;;  %s550_s10 = int_to_ptr.hbm [resolvable:$true] %s549_s10 }
  0x19   : > { %s551_s11 = scalar_lea.hbm %s550_s10, 8  ;;  %s556_s20 = scalar_lea.hbm %s913_s0, 16 }
  0x1a   : > { %p552_p2 = scmp.ne.s32.totalorder %s550_s10, %s551_s11  ;;  %p557_p5 = scmp.lt.s32.totalorder %s550_s10, %s913_s0 }
  0x1b   : > { %p558_p8 = scmp.lt.s32.totalorder %s556_s20, %s551_s11 }
  0x1c   : > { %p554_p4 = pnand %p553_p3, %p552_p2 }
  0x1d   : > { %p559_p10 = por %p558_p8, %p557_p5 }
  0x1e   : > { %p555_p7 = pneg %p554_p4 }
  0x20   : > { %p560_p9 = pnand %p559_p10, %p555_p7 }
  0x22   : > { %563 = shalt.err (!%p560_p9)
}
  0x23   : > { %504 = dma.hbm_to_vmem [thread:$0]  (!%p801_p13), %s159_s5, 128, %s161_s7, %s149_s9  }
  0x24   : > { %p825_p2 = pnand %p478_p0, %p184_p1  ;;  %s175_s10 = scalar_lea.hbm %s914_s1, %s475_s27 }
  0x25   : > { %s177_s11 = sshll.u32 %s175_s10, 4  ;;  %s171_s17 = scalar_lea.vmem [#allocation5], %s474_s28  ;;  %s178_s11 = int_to_ptr.hbm [resolvable:$true] %s177_s11 }
  0x26   : > { %s179_s19 = sshll.u32 %s171_s17, 4  ;;  %s168_s20 = scalar_lea.sflag [#allocation6], %s792_s26  ;;  %s180_s19 = int_to_ptr.vmem [resolvable:$true] %s179_s19 }
  0x27   : > { %s579_s22 = sshra.s32 %s178_s11, 4  ;;  %s586_s9 = scalar_lea.hbm %s914_s1, 16  ;;  %s580_s22 = int_to_ptr.hbm [resolvable:$true] %s579_s22 }
  0x28   : > { %s581_s29 = scalar_lea.hbm %s580_s22, 8  ;;  %p587_p4 = scmp.lt.s32.totalorder %s580_s22, %s914_s1 }
  0x29   : > { %p582_p9 = scmp.ne.s32.totalorder %s580_s22, %s581_s29  ;;  %p588_p7 = scmp.lt.s32.totalorder %s586_s9, %s581_s29 }
  0x2b   : > { %p584_p0 = pnand %p582_p9, %p553_p3  ;;  %p589_p5 = por %p588_p7, %p587_p4 }
  0x2d   : > { %p585_p1 = pneg %p584_p0 }
  0x2f   : > { %p590_p8 = pnand %p589_p5, %p585_p1 }
  0x31   : > { %593 = shalt.err (!%p590_p8)
}
  0x32   : > { %507 = dma.hbm_to_vmem [thread:$0]  (!%p801_p13), %s178_s11, 128, %s180_s19, %s168_s20  }
  0x33   : > { %188 = sbr.rel (%p825_p2) target bundleno = 378 (0x17a), region = 28  ;;  %s847_s26 = sand.u32 (!%p825_p2), 1, %s703_s13  }
  0x34   : > { %s850_s28 = sshll.u32 (!%p825_p2), %s847_s26, 3  ;;  %s191_s6 = scalar_lea.sflag (!%p825_p2), [#allocation3], %s847_s26 }
  0x35   : > { %s194_s10 = scalar_lea.vmem (!%p825_p2), [#allocation2], %s850_s28 }
  0x38   : > { %682 = dma.done.wait (%p776_p6), %s191_s6, 128  }
  0x39   : > { %684 = vsyncadd (%p776_p6), %s191_s6, 4294967168  ;;  %s201_s8 = scalar_lea.sflag [#allocation6], %s847_s26  ;;  %s204_s30 = scalar_lea.vmem [#allocation5], %s850_s28 }
  0x3a   : > { %686 = dma.done.wait (%p776_p6), %s201_s8, 128  }
  0x3b   : > { %688 = vsyncadd (%p776_p6), %s201_s8, 4294967168  ;;  %vm241_vm0 = vcmask 261120   ;;  %v239_v0 = vld [vmem:[%s204_s30] sm:$0xff]  ;;  %v238_v2 = vld [vmem:[%s194_s10] sm:$0xff]  ;;  %v276_v7 = vlaneseq  ;;  %vm296_vm1 = vcmask 64512   ;;  %s230_s23 = scalar_lea.vmem [#allocation7], %s850_s28 }
  0x3c   : > { %v245_v1 = vmul.f32 %v239_v0, %v239_v0  ;;  %483 = vmatpush.xpose.msk.msra.mxu0 %vm241_vm0, %v239_v0  ;;  %v240_v4 = vmul.f32 %v238_v2, %v238_v2  ;;  %s487_s11 = sshll.u32 %s754_s16, 3  ;;  %s328_s22 = sshll.u32 %s230_s23, 4  ;;  %s329_s22 = int_to_ptr.vmem [resolvable:$true] %s328_s22 }
  0x3d   : > { %v277_v8 = vand.u32 127, %v276_v7  ;;  %s326_s20 = scalar_lea.hbm %s915_s2, %s487_s11  ;;  %s311_s5 = scalar_lea.sflag [#allocation4], %s847_s26 }
  0x3e   : > { %v246_v3 = vsel %vm241_vm0, %v245_v1, 0.0  ;;  %v242_v5 = vsel %vm241_vm0, %v240_v4, 0.0  ;;  %s330_s29 = sshll.u32 %s326_s20, 4  ;;  %s629_s16 = scalar_lea.hbm %s915_s2, 16  ;;  %s331_s29 = int_to_ptr.hbm [resolvable:$true] %s330_s29 }
  0x3f   : > { %247 = vadd.xlane.f32.xlu0 %v246_v3  ;;  %484 = vmatmul.msk.f32.vlgmr.msra.gmra.mxu0 %vm241_vm0, %v238_v2  ;;  %s623_s7 = sshra.s32 %s331_s29, 4  ;;  %s624_s7 = int_to_ptr.hbm [resolvable:$true] %s623_s7 }
  0x40   : > { %s625_s9 = scalar_lea.hbm %s624_s7, 8  ;;  %p630_p10 = scmp.lt.s32.totalorder %s624_s7, %s915_s2 }
  0x41   : > { %p626_p6 = scmp.ne.s32.totalorder %s624_s7, %s625_s9  ;;  %p631_p2 = scmp.lt.s32.totalorder %s629_s16, %s625_s9 }
  0x43   : > { %p627_p13 = pnand %p626_p6, %p783_p11  ;;  %p632_p9 = por %p631_p2, %p630_p10 }
  0x45   : > { %p628_p3 = pneg %p627_p13 }
  0x47   : > { %243 = vadd.xlane.f32.xlu0 %v242_v5  ;;  %p633_p0 = pnand %p632_p9, %p628_p3 }
  0xb2   : > { %v248_v6 = vpop.xlane.xlu0 %247 }
  0xb3   : > { %v278_v10 = vperm.slane %v248_v6, %v277_v8 }
  0xba   : > { %v244_v9 = vpop.xlane.xlu0 %243 }
  0xbb   : > { %v292_v12 = vadd.f32 %v278_v10, %v244_v9 }
  0xbc   : > { %v272_v11 = vpop.f32.mrf.mxu0 }
  0xbd   : > { %v293_v13 = vmul.f32 2.0, %v272_v11 }
  0xbf   : > { %v294_v14 = vsub.f32 %v292_v12, %v293_v13 }
  0xc1   : > { %v295_v15 = vmax.f32 %v294_v14, 0.0 }
  0xc3   : > { %v298_v16 = vsel %vm296_vm1, %v295_v15, -inf  ;;  %297 = vst.msk [vmem:[%s230_s23] sm:$0xff] %vm296_vm1, %v295_v15 }
  0xc4   : > { %299 = vmax.xlane.f32.xlu1 %v298_v16 }
  0xc5   : > { %636 = shalt.err (!%p633_p0)
}
  0xc6   : > { %497 = dma.vmem_to_hbm [thread:$0]  (%p783_p11), %s329_s22, 128, %s331_s29, %s311_s5  }
  0xc7   : > { %s340_s23 = scalar_lea.hbm %s916_s3, %s487_s11  ;;  %s237_s17 = scalar_lea.vmem [#allocation8], %s850_s28 }
  0xc8   : > { %s342_s19 = sshll.u32 %s237_s17, 4  ;;  %s344_s20 = sshll.u32 %s340_s23, 4  ;;  %s343_s19 = int_to_ptr.vmem [resolvable:$true] %s342_s19  ;;  %s345_s20 = int_to_ptr.hbm [resolvable:$true] %s344_s20 }
  0xc9   : > { %s316_s22 = scalar_lea.sflag [#allocation9], %s847_s26  ;;  %s651_s29 = sshra.s32 %s345_s20, 4  ;;  %s652_s29 = int_to_ptr.hbm [resolvable:$true] %s651_s29 }
  0xca   : > { %s653_s5 = scalar_lea.hbm %s652_s29, 8  ;;  %s657_s11 = scalar_lea.hbm %s916_s3, 16 }
  0xcb   : > { %p654_p1 = scmp.ne.s32.totalorder %s652_s29, %s653_s5  ;;  %p658_p5 = scmp.lt.s32.totalorder %s652_s29, %s916_s3 }
  0xcc   : > { %p659_p8 = scmp.lt.s32.totalorder %s657_s11, %s653_s5 }
  0xcd   : > { %p655_p4 = pnand %p654_p1, %p783_p11 }
  0xce   : > { %p660_p6 = por %p659_p8, %p658_p5 }
  0xcf   : > { %p656_p7 = pneg %p655_p4 }
  0xd1   : > { %p661_p13 = pnand %p660_p6, %p656_p7 }
 0x137   : > { %v300_v17 = vpop.xlane.xlu1 %299 }
 0x138   : > { %v301_v18 = vrot.slane %v300_v17, 4 }
 0x13a   : > { %v302_v19 = vmax.f32 %v300_v17, %v301_v18 }
 0x13c   : > { %v303_v20 = vrot.slane %v302_v19, 2 }
 0x13e   : > { %v304_v21 = vmax.f32 %v302_v19, %v303_v20 }
 0x140   : > { %v305_v22 = vrot.slane %v304_v21, 1 }
 0x142   : > { %v306_v23 = vmax.f32 %v304_v21, %v305_v22 }
 0x144   : > { %491 = vpush %v306_v23 }
 0x175   : > { %s492_s7 = spop %491 }
 0x176   : > { %v308_v24 = vstv %s492_s7 }
 0x177   : > { %309 = vst [vmem:[%s237_s17] sm:$0xff] %v308_v24 }
 0x178   : > { %664 = shalt.err (!%p661_p13)
}
 0x179   : > { %498 = dma.vmem_to_hbm [thread:$0]  (%p783_p11), %s343_s19, 128, %s345_s20, %s316_s22  }
 0x17a PF: > { %s356_s26 = sand.u32 1, %s699_s12   ;;  %p923_p3 = scmp.ge.s32.totalorder %s711_s15, 2 }
 0x17b   : > { %s357_s16 = scalar_lea.sflag [#allocation4], %s356_s26 }
 0x17c   : > { %p509_p10 = pnand %p923_p3, %p787_p12 }
 0x17e   : > { %p510_p2 = pneg %p509_p10 }
 0x180   : > { %690 = dma.done.wait (%p510_p2), %s357_s16, 128  }
 0x181   : > { %692 = vsyncadd (%p510_p2), %s357_s16, 4294967168  ;;  %s367_s6 = scalar_lea.sflag [#allocation9], %s356_s26 }
 0x182   : > { %694 = dma.done.wait (%p510_p2), %s367_s6, 128  }
 0x183   : > { %696 = vsyncadd (%p510_p2), %s367_s6, 4294967168  ;;  %p23_p11 = scmp.ge.s32.totalorder %s758_s18, 4   ;;  %s924_s12 = smov %s703_s13 }
 0x184   : > { %s925_s13 = smov %s707_s14  ;;  %s926_s14 = smov %s770_s21 }
 0x185   : > { %s927_s15 = smov %s758_s18  ;;  %25 = sbr.rel (!%p23_p11) target bundleno = 9 (0x9), region = 103 }
 0x18a   :  { %373 = vsyncpa [#allocation3], 1 }
 0x18b   :  { %375 = vsyncpa [#allocation3 + $0x1], 1 }
 0x18c   :  { %376 = vsyncpa [#allocation6], 1 }
 0x18d   :  { %378 = vsyncpa [#allocation6 + $0x1], 1 }
 0x18e   :  { %379 = vsyncpa [#allocation4], 1 }
 0x18f   :  { %381 = vsyncpa [#allocation4 + $0x1], 1 }
 0x190   :  { %382 = vsyncpa [#allocation9], 1 }
 0x191   :  { %384 = vsyncpa [#allocation9 + $0x1], 1 }

</bundles_post_ra>
